<compile_context>
chip_gen: v6e
topology: v6e:2x2x1
jax: 0.10.0
libtpu: 0.0.40
codegen_flags: <defaults>
</compile_context>

<pallas_src>
import numpy as np
import jax
import jax.numpy as jnp
from jax.experimental import pallas as pl
from jax.experimental.pallas import tpu as pltpu

# ----- config (mirrors TENet args) ------------------------------------------
BATCH = 2
N_E = 8            # number of graph nodes (series)
WINDOW = 16        # input window length
K_SIZE = (3, 5, 7)
CHANNEL = 4
HID1 = 32
HID2 = 16
HW = 4             # highway window
D = (len(K_SIZE) * WINDOW - sum(K_SIZE) + len(K_SIZE)) * CHANNEL  # = 144
ROWS = BATCH * N_E  # batch folded onto the sublane axis

# The sublane-row packing of the final stage needs 16-lane rows.
assert HID2 <= D and WINDOW <= D and HW <= WINDOW

# Weight-slab layout: every section starts on an 8-row (sublane-tile) boundary
# so the static in-kernel views never straddle a tile boundary.
def _align8(n):
    return -(-n // 8) * 8

WCONV_R0 = 0                                    # rows 0..15 conv Toeplitz, row 16 bias
WG1_R0 = _align8(WINDOW + 1)                    # 24: rows +0..143 W1, row +144 b1
WG2_R0 = WG1_R0 + _align8(D + 1)                # 176: rows +0..31 W2, row +32 b2
WFIN_R0 = WG2_R0 + _align8(HID1 + 1)            # 216: row +0 wg3^T, +1 whw(padded), +2 fused bias
TOTAL_ROWS = WFIN_R0 + _align8(3)               # 224

# Flip on for v6e / v7x at larger shapes (bf16-native MXU). Kept off here:
# the kernel is latency-bound at ROWS=16 and f32 keeps the 1e-3 validation.
USE_BF16_MXU = False


def _mx(t):
    """Cast an MXU operand to bf16 when enabled; accumulation stays f32."""
    return t.astype(jnp.bfloat16) if USE_BF16_MXU else t


# ----- Pallas kernel ---------------------------------------------------------
def tenet_kernel(xp_ref, adj_ref, w_ref, out_ref):
    # Full-tile activation / adjacency reads.
    xp = xp_ref[...]                                   # (ROWS, WINDOW)
    adj = adj_ref[...]                                 # (ROWS, ROWS) block-diag normalized adjacency

    # Static row-window views of the packed weight slab (free ref views).
    wconv = w_ref[WCONV_R0:WCONV_R0 + WINDOW, :]       # (WINDOW, D) Toeplitz conv weights
    bconv = w_ref[WCONV_R0 + WINDOW:WCONV_R0 + WINDOW + 1, :]          # (1, D)
    wg1 = w_ref[WG1_R0:WG1_R0 + D, 0:HID1]             # (D, HID1)
    bg1 = w_ref[WG1_R0 + D:WG1_R0 + D + 1, 0:HID1]     # (1, HID1)
    wg2 = w_ref[WG2_R0:WG2_R0 + HID1, 0:HID2]          # (HID1, HID2)
    bg2 = w_ref[WG2_R0 + HID1:WG2_R0 + HID1 + 1, 0:HID2]              # (1, HID2)
    wg3_row = w_ref[WFIN_R0:WFIN_R0 + 1, 0:HID2]       # (1, HID2)   = wg3^T
    hw_row = w_ref[WFIN_R0 + 1:WFIN_R0 + 2, 0:WINDOW]  # (1, WINDOW) = whw in last HW lanes
    bias_fin = w_ref[WFIN_R0 + 2:WFIN_R0 + 3, 0:1]     # (1, 1)      = bg3 + bhw

    # Conv stage as a single Toeplitz matmul: x_conv = relu(xp @ Wconv + bconv)
    x_conv = jnp.maximum(
        jnp.dot(_mx(xp), _mx(wconv), preferred_element_type=jnp.float32) + bconv,
        0.0)                                           # (ROWS, D)

    # GCN1: relu(adj @ (x_conv @ W1) + b1)
    xw = jnp.dot(_mx(x_conv), _mx(wg1), preferred_element_type=jnp.float32)
    h1 = jnp.maximum(
        jnp.dot(_mx(adj), _mx(xw), preferred_element_type=jnp.float32) + bg1,
        0.0)                                           # (ROWS, HID1)

    # GCN2: relu(adj @ (h1 @ W2) + b2)
    h2 = jnp.maximum(
        jnp.dot(_mx(adj),
                _mx(jnp.dot(_mx(h1), _mx(wg2), preferred_element_type=jnp.float32)),
                preferred_element_type=jnp.float32) + bg2,
        0.0)                                           # (ROWS, HID2)

    # GCN3 + highway, using (adj @ h2) @ wg3 == adj @ (h2 @ wg3).
    # 1-column projections done as VPU/XLU lane reductions against full
    # sublane-indexed weight rows (no unaligned lane slices, no 1-wide matmuls).
    h2a = jnp.dot(_mx(adj), _mx(h2), preferred_element_type=jnp.float32)  # (ROWS, HID2)
    y = (jnp.sum(h2a * wg3_row, axis=-1, keepdims=True)
         + jnp.sum(xp * hw_row, axis=-1, keepdims=True)
         + bias_fin)                                   # (ROWS, 1)
    out_ref[...] = y


# ----- host-side parameter packing -------------------------------------------
def build_wconv(w1, b1, w2, b2, w3, b3):
    """Banded Toeplitz matrix so xp @ Wconv reproduces the three 'valid' 1-D
    convolutions in PyTorch's (branch-major, channel, time) column ordering,
    plus the per-column bias row."""
    Wc = np.zeros((WINDOW, D), np.float32)
    bc = np.zeros((1, D), np.float32)
    off = 0
    for (w, b, k) in ((np.asarray(w1), np.asarray(b1), K_SIZE[0]),
                      (np.asarray(w2), np.asarray(b2), K_SIZE[1]),
                      (np.asarray(w3), np.asarray(b3), K_SIZE[2])):
        L = WINDOW - k + 1
        for c in range(CHANNEL):
            for t in range(L):
                col = off + c * L + t
                for j in range(k):
                    Wc[t + j, col] = w[c, j]
                bc[0, col] = b[0, c]
        off += CHANNEL * L
    return Wc, bc


def pack_params(params, adj_norm):
    """Pack ALL 16 parameter tensors into one (TOTAL_ROWS, D) f32 slab and
    build the block-diagonal GCN-normalized adjacency."""
    (w1, b1, w2, b2, w3, b3, wg1, bg1, wg2, bg2, wg3, bg3, whw, bhw) = [
        np.asarray(p, np.float32) for p in params]

    W = np.zeros((TOTAL_ROWS, D), np.float32)
    # conv stage
    Wc, bc = build_wconv(w1, b1, w2, b2, w3, b3)
    W[WCONV_R0:WCONV_R0 + WINDOW, :] = Wc
    W[WCONV_R0 + WINDOW, :] = bc[0]
    # gcn1
    W[WG1_R0:WG1_R0 + D, 0:HID1] = wg1
    W[WG1_R0 + D, 0:HID1] = bg1[0]
    # gcn2
    W[WG2_R0:WG2_R0 + HID1, 0:HID2] = wg2
    W[WG2_R0 + HID1, 0:HID2] = bg2[0]
    # final stage: wg3^T row, highway weights in the LAST HW lanes of a
    # WINDOW-wide row (so a full-row lane reduction over xp is exact), fused bias.
    W[WFIN_R0, 0:HID2] = wg3[:, 0]
    W[WFIN_R0 + 1, WINDOW - HW:WINDOW] = whw[:, 0]
    W[WFIN_R0 + 2, 0] = bg3[0, 0] + bhw[0, 0]

    # block-diagonal adjacency: one matmul applies the per-batch 8x8 adjacency
    adj_bd = np.kron(np.eye(BATCH, dtype=np.float32),
                     np.asarray(adj_norm, np.float32))            # (ROWS, ROWS)
    return jnp.asarray(adj_bd), jnp.asarray(W)


# ----- wrapper ---------------------------------------------------------------
def tenet_forward(x, adj_bd, weights):
    # x: (B, WINDOW, N_E) -> (B*N_E, WINDOW); row r = b*N_E + n
    xp = jnp.transpose(x, (0, 2, 1)).reshape(ROWS, WINDOW).astype(jnp.float32)

    vmem = lambda: pl.BlockSpec(memory_space=pltpu.MemorySpace.VMEM)
    out = pl.pallas_call(
        tenet_kernel,
        out_shape=jax.ShapeDtypeStruct((ROWS, 1), jnp.float32),
        in_specs=[vmem(), vmem(), vmem()],
        out_specs=vmem(),
    )(xp, adj_bd, weights)
    return out.reshape(BATCH, N_E)


# ----- pure-JAX reference (PyTorch semantics, independent code path) ---------
def ref_forward(x, adj_norm, params):
    (w1, b1, w2, b2, w3, b3, wg1, bg1, wg2, bg2, wg3, bg3, whw, bhw) = params
    xp = jnp.transpose(x, (0, 2, 1))                      # (B, N_E, WINDOW)

    def conv(w, b, k):
        L = WINDOW - k + 1
        chans = [sum(w[c, j] * xp[:, :, j:j + L] for j in range(k)) + b[0, c]
                 for c in range(CHANNEL)]
        out = jnp.stack(chans, axis=2)                    # (B, N_E, C, L)
        return out.reshape(BATCH, N_E, CHANNEL * L)

    x_conv = jax.nn.relu(jnp.concatenate(
        [conv(w1, b1, K_SIZE[0]), conv(w2, b2, K_SIZE[1]), conv(w3, b3, K_SIZE[2])],
        axis=2))                                          # (B, N_E, D)

    h1 = jax.nn.relu(jnp.einsum('ij,bjh->bih', adj_norm, x_conv @ wg1) + bg1)
    h2 = jax.nn.relu(jnp.einsum('ij,bjh->bih', adj_norm, h1 @ wg2) + bg2)
    h3 = jnp.einsum('ij,bjh->bih', adj_norm, h2 @ wg3) + bg3
    z = xp[:, :, WINDOW - HW:] @ whw + bhw
    return (h3 + z)[:, :, 0]


# ----- main ------------------------------------------------------------------
if __name__ == "__main__":
    key = jax.random.PRNGKey(0)
    ks = jax.random.split(key, 16)

    def init(k, shape, scale=0.2):
        return (scale * jax.random.normal(k, shape)).astype(jnp.float32)

    w1 = init(ks[0], (CHANNEL, K_SIZE[0])); b1 = init(ks[1], (1, CHANNEL))
    w2 = init(ks[2], (CHANNEL, K_SIZE[1])); b2 = init(ks[3], (1, CHANNEL))
    w3 = init(ks[4], (CHANNEL, K_SIZE[2])); b3 = init(ks[5], (1, CHANNEL))
    wg1 = init(ks[6], (D, HID1));    bg1 = init(ks[7], (1, HID1))
    wg2 = init(ks[8], (HID1, HID2)); bg2 = init(ks[9], (1, HID2))
    wg3 = init(ks[10], (HID2, 1));   bg3 = init(ks[11], (1, 1))
    whw = init(ks[12], (HW, 1));     bhw = init(ks[13], (1, 1))
    params = (w1, b1, w2, b2, w3, b3, wg1, bg1, wg2, bg2, wg3, bg3, whw, bhw)

    # Adjacency: Model._set_A does A / sum(A, 0); DenseGCNConv(add_loop=True)
    # then sets the diagonal to 1 and applies symmetric deg^-1/2 normalization.
    A_raw = jnp.abs(jax.random.normal(ks[14], (N_E, N_E))).astype(jnp.float32) + 0.1
    A = A_raw / jnp.sum(A_raw, axis=0)
    adj = A.at[jnp.arange(N_E), jnp.arange(N_E)].set(1.0)
    deg = jnp.maximum(jnp.sum(adj, axis=-1), 1.0)
    dis = deg ** -0.5
    adj_norm = (dis[:, None] * adj * dis[None, :]).astype(jnp.float32)

    # input: (batch, window, n_e)  — same axis convention as the PyTorch model
    x = jax.random.normal(ks[15], (BATCH, WINDOW, N_E), dtype=jnp.float32)

    # Host-side one-time packing (Toeplitz conv matrix, fused biases,
    # block-diag adjacency, single weight slab).
    adj_bd, weights = pack_params(params, adj_norm)

    out = tenet_forward(x, adj_bd, weights)
    out = jax.block_until_ready(out)

    ref = ref_forward(x, adj_norm, params)
    assert out.shape == (BATCH, N_E), out.shape
    assert jnp.allclose(out, ref, rtol=1e-3, atol=1e-3), (out, ref)

    print("KERNEL_OK")
</pallas_src>

<mosaic_0001>
module attributes {stable_mosaic.version = 11 : i64} {
  func.func @tenet_kernel(%arg0: memref<16x16xf32, #tpu.memory_space<vmem>>, %arg1: memref<16x16xf32, #tpu.memory_space<vmem>>, %arg2: memref<224x144xf32, #tpu.memory_space<vmem>>, %arg3: memref<16x1xf32, #tpu.memory_space<vmem>>) attributes {dimension_semantics = [], scalar_prefetch = 0 : i64, scratch_operands = 0 : i64, tpu.core_type = #tpu.core_type<tc>} {
    %c0 = arith.constant 0 : index
    %c0_0 = arith.constant 0 : index
    %0 = vector.load %arg0[%c0, %c0_0] : memref<16x16xf32, #tpu.memory_space<vmem>>, vector<16x16xf32>
    %c0_1 = arith.constant 0 : index
    %c0_2 = arith.constant 0 : index
    %1 = vector.load %arg1[%c0_1, %c0_2] : memref<16x16xf32, #tpu.memory_space<vmem>>, vector<16x16xf32>
    %c0_3 = arith.constant 0 : index
    %c0_4 = arith.constant 0 : index
    %2 = vector.load %arg2[%c0_3, %c0_4] : memref<224x144xf32, #tpu.memory_space<vmem>>, vector<16x144xf32>
    %c16 = arith.constant 16 : index
    %c0_5 = arith.constant 0 : index
    %3 = vector.load %arg2[%c16, %c0_5] : memref<224x144xf32, #tpu.memory_space<vmem>>, vector<1x144xf32>
    %c24 = arith.constant 24 : index
    %c0_6 = arith.constant 0 : index
    %4 = vector.load %arg2[%c24, %c0_6] : memref<224x144xf32, #tpu.memory_space<vmem>>, vector<144x32xf32>
    %c168 = arith.constant 168 : index
    %c0_7 = arith.constant 0 : index
    %5 = vector.load %arg2[%c168, %c0_7] : memref<224x144xf32, #tpu.memory_space<vmem>>, vector<1x32xf32>
    %c176 = arith.constant 176 : index
    %c0_8 = arith.constant 0 : index
    %6 = vector.load %arg2[%c176, %c0_8] : memref<224x144xf32, #tpu.memory_space<vmem>>, vector<32x16xf32>
    %c208 = arith.constant 208 : index
    %c0_9 = arith.constant 0 : index
    %7 = vector.load %arg2[%c208, %c0_9] : memref<224x144xf32, #tpu.memory_space<vmem>>, vector<1x16xf32>
    %c216 = arith.constant 216 : index
    %c0_10 = arith.constant 0 : index
    %8 = vector.load %arg2[%c216, %c0_10] : memref<224x144xf32, #tpu.memory_space<vmem>>, vector<1x16xf32>
    %c217 = arith.constant 217 : index
    %c0_11 = arith.constant 0 : index
    %9 = vector.load %arg2[%c217, %c0_11] : memref<224x144xf32, #tpu.memory_space<vmem>>, vector<1x16xf32>
    %c218 = arith.constant 218 : index
    %c0_12 = arith.constant 0 : index
    %10 = vector.load %arg2[%c218, %c0_12] : memref<224x144xf32, #tpu.memory_space<vmem>>, vector<1x1xf32>
    %cst = arith.constant dense<0.000000e+00> : vector<16x144xf32>
    %11 = tpu.matmul %0, %2, %cst {dimension_numbers = #tpu.dot_dimension_numbers<[1], [0], [0], [1], [0, 0, 1, 1], [], []>} : vector<16x16xf32>, vector<16x144xf32>, vector<16x144xf32> -> vector<16x144xf32>
    %12 = vector.broadcast %3 : vector<1x144xf32> to vector<16x144xf32>
    %13 = arith.addf %11, %12 : vector<16x144xf32>
    %cst_13 = arith.constant 0.000000e+00 : f32
    %14 = vector.broadcast %cst_13 : f32 to vector<16x144xf32>
    %15 = arith.maximumf %13, %14 : vector<16x144xf32>
    %cst_14 = arith.constant dense<0.000000e+00> : vector<16x32xf32>
    %16 = tpu.matmul %15, %4, %cst_14 {dimension_numbers = #tpu.dot_dimension_numbers<[1], [0], [0], [1], [0, 0, 1, 1], [], []>} : vector<16x144xf32>, vector<144x32xf32>, vector<16x32xf32> -> vector<16x32xf32>
    %cst_15 = arith.constant dense<0.000000e+00> : vector<16x32xf32>
    %17 = tpu.matmul %1, %16, %cst_15 {dimension_numbers = #tpu.dot_dimension_numbers<[1], [0], [0], [1], [0, 0, 1, 1], [], []>} : vector<16x16xf32>, vector<16x32xf32>, vector<16x32xf32> -> vector<16x32xf32>
    %18 = vector.broadcast %5 : vector<1x32xf32> to vector<16x32xf32>
    %19 = arith.addf %17, %18 : vector<16x32xf32>
    %cst_16 = arith.constant 0.000000e+00 : f32
    %20 = vector.broadcast %cst_16 : f32 to vector<16x32xf32>
    %21 = arith.maximumf %19, %20 : vector<16x32xf32>
    %cst_17 = arith.constant dense<0.000000e+00> : vector<16x16xf32>
    %22 = tpu.matmul %21, %6, %cst_17 {dimension_numbers = #tpu.dot_dimension_numbers<[1], [0], [0], [1], [0, 0, 1, 1], [], []>} : vector<16x32xf32>, vector<32x16xf32>, vector<16x16xf32> -> vector<16x16xf32>
    %cst_18 = arith.constant dense<0.000000e+00> : vector<16x16xf32>
    %23 = tpu.matmul %1, %22, %cst_18 {dimension_numbers = #tpu.dot_dimension_numbers<[1], [0], [0], [1], [0, 0, 1, 1], [], []>} : vector<16x16xf32>, vector<16x16xf32>, vector<16x16xf32> -> vector<16x16xf32>
    %24 = vector.broadcast %7 : vector<1x16xf32> to vector<16x16xf32>
    %25 = arith.addf %23, %24 : vector<16x16xf32>
    %cst_19 = arith.constant 0.000000e+00 : f32
    %26 = vector.broadcast %cst_19 : f32 to vector<16x16xf32>
    %27 = arith.maximumf %25, %26 : vector<16x16xf32>
    %cst_20 = arith.constant dense<0.000000e+00> : vector<16x16xf32>
    %28 = tpu.matmul %1, %27, %cst_20 {dimension_numbers = #tpu.dot_dimension_numbers<[1], [0], [0], [1], [0, 0, 1, 1], [], []>} : vector<16x16xf32>, vector<16x16xf32>, vector<16x16xf32> -> vector<16x16xf32>
    %29 = vector.broadcast %8 : vector<1x16xf32> to vector<16x16xf32>
    %30 = arith.mulf %28, %29 : vector<16x16xf32>
    %cst_21 = arith.constant dense<0.000000e+00> : vector<16xf32>
    %31 = vector.multi_reduction <add>, %30, %cst_21 [1] : vector<16x16xf32> to vector<16xf32>
    %32 = vector.shape_cast %31 : vector<16xf32> to vector<16x1xf32>
    %33 = vector.broadcast %9 : vector<1x16xf32> to vector<16x16xf32>
    %34 = arith.mulf %0, %33 : vector<16x16xf32>
    %cst_22 = arith.constant dense<0.000000e+00> : vector<16xf32>
    %35 = vector.multi_reduction <add>, %34, %cst_22 [1] : vector<16x16xf32> to vector<16xf32>
    %36 = vector.shape_cast %35 : vector<16xf32> to vector<16x1xf32>
    %37 = arith.addf %32, %36 : vector<16x1xf32>
    %38 = vector.broadcast %10 : vector<1x1xf32> to vector<16x1xf32>
    %39 = arith.addf %37, %38 : vector<16x1xf32>
    %c0_23 = arith.constant 0 : index
    %c0_24 = arith.constant 0 : index
    %40 = vector.load %arg3[%c0_23, %c0_24] : memref<16x1xf32, #tpu.memory_space<vmem>>, vector<16x1xf32>
    tpu.vector_store %arg3[%c0_23, %c0_24], %39 {strides = array<i32>} : memref<16x1xf32, #tpu.memory_space<vmem>>, vector<16x1xf32>,
    return
  }
}

</mosaic_0001>

<bundles_post_ra>
// kernel: tpu_custom_call.1
= control target key start
LH: loop header
LB: loop body
LE: loop exit
PB: predicated region body
PF: predicated region fallthrough
CT: control target
= control target key end

     0   :  { %v639_v3 = vmov 0.0   ;;  %vm62_vm0 = vcmask 130048   ;;  %v52_v25 = vlaneseq  ;;  %vm314_vm1 = vcmask 261120   ;;  %s816_s2 = inlined_call_operand.vmem [shape: f32[224,144], index: 2, kind: input, shape index: {}]   ;;  %s817_s0 = inlined_call_operand.vmem [shape: f32[16,16], index: 0, kind: input, shape index: {}]   ;;  %s818_s1 = inlined_call_operand.vmem [shape: f32[16,16], index: 1, kind: input, shape index: {}]   ;;  %s819_s3 = inlined_call_operand.vmem [shape: f32[16,1], index: 3, kind: output, shape index: {}]  }
   0x1   :  { %v21_v0 = vld [vmem:[%s816_s2 + $0x18] sm:$0xff]  ;;  %v20_v1 = vld [vmem:[%s816_s2 + $0x10] sm:$0xff]  ;;  %v19_v2 = vld [vmem:[%s816_s2 + $0x8] sm:$0xff]  ;;  %133 = vmatprep.mubr.f32.mxu0 %v639_v3  ;;  %156 = vmatprep.subr.mxu1 %v639_v3  ;;  %vm568_vm2 = vcmask 7168  }
   0x2   :  { %97 = vmatprep.subr.mxu0 %v21_v0  ;;  %v18_v4 = vld [vmem:[%s816_s2] sm:$0xff]  ;;  %v38_v7 = vld [vmem:[%s816_s2 + $0x110] sm:$0xff]  ;;  %v695_v9 = vld [vmem:[%s817_s0 + $0x8] sm:$0xff]  ;;  %v53_v26 = vshrl.u32 %v52_v25, 7 }
   0x3   :  { %98 = vmatpush1.msra.mxu0 %v20_v1  ;;  %v677_v5 = vld [vmem:[%s817_s0] sm:$0xff]  ;;  %v36_v10 = vld [vmem:[%s816_s2 + $0xf0] sm:$0xff]  ;;  %v17_v49 = vld [vmem:[%s818_s1 + $0x8] sm:$0xff] }
   0x4   :  { %v39_v6 = vld [vmem:[%s816_s2 + $0x120] sm:$0xff]  ;;  %99 = vmatprep.subr.mxu0 %v19_v2  ;;  %v34_v12 = vld [vmem:[%s816_s2 + $0xd0] sm:$0xff]  ;;  %v54_v27 = vsub.s32 0, %v53_v26  ;;  %v58_v29 = vsub.s32 1, %v53_v26 }
   0x5   :  { %157 = vmatpush1.msra.mxu1 %v39_v6  ;;  %100 = vmatpush1.msra.mxu0 %v18_v4  ;;  %v37_v8 = vld [vmem:[%s816_s2 + $0x100] sm:$0xff]  ;;  %v32_v14 = vld [vmem:[%s816_s2 + $0xb0] sm:$0xff] }
   0x6   :  { %158 = vmatprep.subr.mxu1 %v639_v3  ;;  %576 = vmatmul.mubr.msk.f32.vlgmr.msra.gmra.mxu0 %vm62_vm0, %v677_v5  ;;  %v35_v11 = vld [vmem:[%s816_s2 + $0xe0] sm:$0xff]  ;;  %v30_v16 = vld [vmem:[%s816_s2 + $0x90] sm:$0xff] }
   0x7   :  { %159 = vmatpush1.msra.mxu1 %v38_v7  ;;  %139 = vmatprep.mubr.f32.mxu0 %v639_v3  ;;  %v33_v13 = vld [vmem:[%s816_s2 + $0xc0] sm:$0xff]  ;;  %v28_v18 = vld [vmem:[%s816_s2 + $0x70] sm:$0xff] }
   0x8   :  { %160 = vmatprep.subr.mxu1 %v639_v3  ;;  %v31_v15 = vld [vmem:[%s816_s2 + $0xa0] sm:$0xff]  ;;  %v26_v20 = vld [vmem:[%s816_s2 + $0x50] sm:$0xff] }
   0x9   :  { %161 = vmatpush1.msra.mxu1 %v37_v8  ;;  %v29_v17 = vld [vmem:[%s816_s2 + $0x80] sm:$0xff]  ;;  %v24_v22 = vld [vmem:[%s816_s2 + $0x30] sm:$0xff] }
   0xa   :  { %162 = vmatprep.subr.mxu1 %v639_v3  ;;  %577 = vmatmul.mubr.msk.f32.gmra.mxu0 %vm62_vm0, %v695_v9  ;;  %v27_v19 = vld [vmem:[%s816_s2 + $0x60] sm:$0xff]  ;;  %v40_v24 = vld [vmem:[%s816_s2 + $0x130] sm:$0xff] }
   0xb   :  { %163 = vmatpush1.msra.mxu1 %v36_v10  ;;  %v25_v21 = vld [vmem:[%s816_s2 + $0x40] sm:$0xff]  ;;  %v46_v50 = vld [vmem:[%s816_s2 + $0x190] sm:$0xff] }
   0xc   :  { %164 = vmatprep.subr.mxu1 %v639_v3  ;;  %v41_v23 = vld [vmem:[%s816_s2 + $0x140] sm:$0xff]  ;;  %v44_v52 = vld [vmem:[%s816_s2 + $0x170] sm:$0xff] }
   0xd   :  { %165 = vmatpush1.msra.mxu1 %v35_v11  ;;  %v575_v28 = vld [vmem:[%s816_s2 + $0x20] ss:$8 sm:$0x3]  ;;  %v42_v54 = vld [vmem:[%s816_s2 + $0x150] ss:$0 sm:$0xff] }
   0xe   :  { %166 = vmatprep.subr.mxu1 %v639_v3  ;;  %v55_v30 = vrot.slane %v575_v28, %v54_v27  ;;  %v59_v31 = vrot.slane %v575_v28, %v58_v29  ;;  %v16_v44 = vld [vmem:[%s818_s1] sm:$0xff]  ;;  %v49_v7 = vld [vmem:[%s816_s2 + $0x1b1] ss:$0 sm:$0xff] }
   0xf   :  { %167 = vmatpush1.msra.mxu1 %v34_v12  ;;  %610 = vmatprep.mubr.msk.f32.mxu0 %vm62_vm0, %v16_v44  ;;  %v45_v51 = vld [vmem:[%s816_s2 + $0x180] sm:$0xff]  ;;  %v556_v8 = vmul.f32 %v49_v7, %v677_v5  ;;  %v557_v11 = vmul.f32 %v49_v7, %v695_v9  ;;  %v50_v9 = vld [vmem:[%s816_s2 + $0x1b2] ss:$0 sm:$0xff] }
  0x10   :  { %168 = vmatprep.subr.mxu1 %v639_v3  ;;  %v43_v53 = vld [vmem:[%s816_s2 + $0x160] sm:$0xff] }
  0x11   :  { %169 = vmatpush1.msra.mxu1 %v33_v13  ;;  %v47_v63 = vld [vmem:[%s816_s2 + $0x1a0] ss:$0 sm:$0xff]  ;;  %v558_v10 = vsel %vm62_vm0, %v556_v8, 0.0  ;;  %v561_v12 = vsel %vm62_vm0, %v557_v11, 0.0 }
  0x12   :  { %170 = vmatprep.subr.mxu1 %v639_v3  ;;  %559 = vadd.xlane.f32.xlu1 %v558_v10 }
  0x13   :  { %171 = vmatpush1.msra.mxu1 %v32_v14  ;;  %v48_v14 = vld [vmem:[%s816_s2 + $0x1b0] ss:$0 sm:$0xff] }
  0x14   :  { %172 = vmatprep.subr.mxu1 %v639_v3 }
  0x15   :  { %173 = vmatpush1.msra.mxu1 %v31_v15 }
  0x16   :  { %174 = vmatprep.subr.mxu1 %v639_v3  ;;  %562 = vadd.xlane.f32.xlu1 %v561_v12 }
  0x17   :  { %175 = vmatpush1.msra.mxu1 %v30_v16 }
  0x18   :  { %176 = vmatprep.subr.mxu1 %v639_v3 }
  0x19   :  { %177 = vmatpush1.msra.mxu1 %v29_v17 }
  0x1a   :  { %178 = vmatprep.subr.mxu1 %v639_v3 }
  0x1b   :  { %179 = vmatpush1.msra.mxu1 %v28_v18 }
  0x1c   :  { %180 = vmatprep.subr.mxu1 %v639_v3 }
  0x1d   :  { %181 = vmatpush1.msra.mxu1 %v27_v19 }
  0x1e   :  { %182 = vmatprep.subr.mxu1 %v639_v3 }
  0x1f   :  { %183 = vmatpush1.msra.mxu1 %v26_v20 }
  0x20   :  { %184 = vmatprep.subr.mxu1 %v639_v3 }
  0x21   :  { %185 = vmatpush1.msra.mxu1 %v25_v21 }
  0x22   :  { %186 = vmatprep.subr.mxu1 %v639_v3 }
  0x23   :  { %187 = vmatpush1.msra.mxu1 %v24_v22 }
  0x24   :  { %216 = vmatprep.subr.mxu1 %v639_v3 }
  0x25   :  { %217 = vmatpush2.msra.mxu1 %v41_v23 }
  0x26   :  { %218 = vmatprep.subr.mxu1 %v639_v3 }
  0x27   :  { %219 = vmatpush2.msra.mxu1 %v40_v24 }
  0x9b   :  { %v560_v19 = vpop.xlane.xlu1 %559 }
  0x9f   :  { %v563_v22 = vpop.xlane.xlu1 %562 }
  0xc6   :  { %v135_v32 = vpop.f32.mrf.mxu0 }
  0xc7   :  { %v136_v33 = vadd.f32 %v135_v32, %v55_v30 }
  0xc8   :  { %v137_v34 = vpop.f32.mrf.mxu0 }
  0xc9   :  { %v138_v35 = vadd.f32 %v137_v34, %v59_v31  ;;  %v146_v38 = vmax.f32 %v136_v33, 0.0 }
  0xca   :  { %v141_v36 = vpop.f32.mrf.mxu0 }
  0xcb   :  { %v147_v37 = vmax.f32 %v138_v35, 0.0  ;;  %v142_v39 = vadd.f32 %v141_v36, %v55_v30 }
  0xcc   :  { %v143_v40 = vpop.f32.mrf.mxu0 }
  0xcd   :  { %v144_v41 = vadd.f32 %v143_v40, %v59_v31  ;;  %578 = vmatprep.mubr.msk.f32.mxu1 %vm62_vm0, %v147_v37  ;;  %v148_v43 = vmax.f32 %v142_v39, 0.0 }
  0xce   :  { %221 = vmatmul.mubr.f32.vlgmr.msra.gmra.mxu1 %v146_v38 }
  0xcf   :  { %v149_v42 = vmax.f32 %v144_v41, 0.0 }
  0xd1   :  { %579 = vmatprep.mubr.msk.f32.mxu1 %vm62_vm0, %v149_v42 }
  0xd2   :  { %226 = vmatmul.mubr.f32.gmra.mxu1 %v148_v43 }
 0x18e   :  { %v222_v45 = vpop.f32.mrf.mxu1 }
 0x190   :  { %v224_v46 = vpop.f32.mrf.mxu1 }
 0x192   :  { %v227_v47 = vpop.f32.mrf.mxu1 }
 0x193   :  { %606 = vmatprep.subr.mxu0 %v227_v47 }
 0x194   :  { %v229_v48 = vpop.f32.mrf.mxu1  ;;  %607 = vmatpush3.msra.mxu0 %v227_v47 }
 0x195   :  { %608 = vmatprep.subr.mxu0 %v222_v45 }
 0x196   :  { %609 = vmatpush3.msra.mxu0 %v222_v45 }
 0x197   :  { %611 = vmatmul.mubr.msk.f32.vlgmr.msra.gmra.mxu0 %vm62_vm0, %v17_v49  ;;  %613 = vmatprep.subr.mxu0 %v46_v50 }
 0x198   :  { %614 = vmatpush3.msra.mxu0 %v46_v50 }
 0x199   :  { %615 = vmatprep.subr.mxu0 %v45_v51 }
 0x19a   :  { %616 = vmatpush3.msra.mxu0 %v45_v51 }
 0x19b   :  { %617 = vmatprep.subr.mxu0 %v44_v52 }
 0x19c   :  { %618 = vmatpush3.msra.mxu0 %v44_v52 }
 0x19d   :  { %619 = vmatprep.subr.mxu0 %v43_v53 }
 0x19e   :  { %620 = vmatpush3.msra.mxu0 %v43_v53 }
 0x257   :  { %v612_v55 = vpop.f32.mrf.mxu0 }
 0x258   :  { %v309_v56 = vadd.f32 %v612_v55, %v42_v54 }
 0x259   :  { %v303_v57 = vpop.f32.mrf.mxu0 }
 0x25a   :  { %v304_v58 = vadd.f32 %v303_v57, %v42_v54  ;;  %v313_v60 = vmax.f32 %v309_v56, 0.0 }
 0x25c   :  { %v312_v59 = vmax.f32 %v304_v58, 0.0 }
 0x25e   :  { %621 = vmatprep.mubr.msk.f32.mxu0 %vm314_vm1, %v312_v59 }
 0x25f   :  { %622 = vmatmul.mubr.msk.f32.vlgmr.msra.gmra.mxu0 %vm314_vm1, %v313_v60 }
 0x260   :  { %628 = vmatprep.mubr.msk.f32.mxu0 %vm62_vm0, %v16_v44 }
 0x31f   :  { %v623_v61 = vpop.f32.mrf.mxu0 }
 0x320   :  { %624 = vmatprep.subr.mxu0 %v623_v61 }
 0x321   :  { %v387_v62 = vpop.f32.mrf.mxu0  ;;  %625 = vmatpush3.msra.mxu0 %v623_v61 }
 0x322   :  { %626 = vmatprep.subr.mxu0 %v387_v62 }
 0x323   :  { %627 = vmatpush3.msra.mxu0 %v387_v62 }
 0x324   :  { %629 = vmatmul.mubr.msk.f32.vlgmr.msra.gmra.mxu0 %vm62_vm0, %v17_v49 }
 0x325   :  { %635 = vmatprep.mubr.msk.f32.mxu0 %vm62_vm0, %v16_v44 }
 0x3e4   :  { %v630_v0 = vpop.f32.mrf.mxu0 }
 0x3e5   :  { %v468_v1 = vadd.f32 %v630_v0, %v47_v63 }
 0x3e6   :  { %v462_v2 = vpop.f32.mrf.mxu0 }
 0x3e7   :  { %v472_v3 = vmax.f32 %v468_v1, 0.0  ;;  %v463_v4 = vadd.f32 %v462_v2, %v47_v63 }
 0x3e9   :  { %v471_v6 = vmax.f32 %v463_v4, 0.0  ;;  %631 = vmatprep.subr.mxu0 %v472_v3 }
 0x3ea   :  { %632 = vmatpush3.msra.mxu0 %v472_v3 }
 0x3eb   :  { %633 = vmatprep.subr.mxu0 %v471_v6 }
 0x3ec   :  { %634 = vmatpush3.msra.mxu0 %v471_v6 }
 0x3ed   :  { %636 = vmatmul.mubr.msk.f32.vlgmr.msra.gmra.mxu0 %vm62_vm0, %v17_v49 }
 0x4ad   :  { %v637_v13 = vpop.f32.mrf.mxu0 }
 0x4ae   :  { %v549_v17 = vmul.f32 %v637_v13, %v48_v14 }
 0x4af   :  { %v539_v15 = vpop.f32.mrf.mxu0 }
 0x4b0   :  { %v548_v16 = vmul.f32 %v539_v15, %v48_v14  ;;  %v553_v5 = vsel %vm62_vm0, %v549_v17, 0.0 }
 0x4b2   :  { %v550_v18 = vsel %vm62_vm0, %v548_v16, 0.0 }
 0x4b3   :  { %551 = vadd.xlane.f32.xlu0 %v550_v18 }
 0x4b7   :  { %554 = vadd.xlane.f32.xlu0 %v553_v5 }
 0x53c   :  { %v552_v20 = vpop.xlane.xlu0 %551 }
 0x53d   :  { %v564_v21 = vadd.f32 %v560_v19, %v552_v20 }
 0x53f   :  { %v566_v23 = vadd.f32 %v564_v21, %v50_v9 }
 0x540   :  { %v555_v24 = vpop.xlane.xlu0 %554 }
 0x541   :  { %569 = vst.msk [vmem:[%s819_s3] sm:$0xff] %vm568_vm2, %v566_v23  ;;  %v565_v25 = vadd.f32 %v563_v22, %v555_v24 }
 0x543   :  { %v567_v26 = vadd.f32 %v565_v25, %v50_v9 }
 0x545   :  { %570 = vst.msk [vmem:[%s819_s3 + $0x8] sm:$0xff] %vm568_vm2, %v567_v26 }

</bundles_post_ra>
